<compile_context>
chip_gen: v6e
topology: v6e:2x2x1
jax: 0.10.0
libtpu: 0.0.40
codegen_flags: <defaults>
</compile_context>

<pallas_src>
import functools

import jax
import jax.numpy as jnp
from jax.experimental import pallas as pl
from jax.experimental.pallas import tpu as pltpu  # noqa: F401  (TPU backend)

LANE = 128  # TPU vreg lane width


def _round_up(x, m):
    return ((x + m - 1) // m) * m


def _full_spec(shape):
    # Single grid point; block covers the whole array (kept resident in VMEM).
    return pl.BlockSpec(shape, lambda: tuple(0 for _ in shape))


# ----------------------------------------------------------------------------
# Fused Pallas kernel: convs -> tanh -> lin1 -> lin2 -> log_softmax
# ----------------------------------------------------------------------------
def _fused_gcn_kernel(adj_ref, x_ref, *refs, n_convs, out_dim):
    # refs layout:
    #   [w_0, b_0, ..., w_{n-1}, b_{n-1}, lin1_w, lin1_b, lin2_w, lin2_b,
    #    emb_ref, out_ref]
    conv_refs = refs[: 2 * n_convs]
    lin1_w_ref, lin1_b_ref, lin2_w_ref, lin2_b_ref = refs[2 * n_convs: 2 * n_convs + 4]
    emb_ref, out_ref = refs[2 * n_convs + 4:]

    adj = adj_ref[...]
    h = x_ref[...]

    for i in range(n_convs):
        w = conv_refs[2 * i][...]
        b = conv_refs[2 * i + 1][...]
        c_in, c_out = w.shape
        if c_in <= c_out:
            # (Â @ H) @ W : N² term uses the smaller C_in
            pre = jnp.dot(
                jnp.dot(adj, h, preferred_element_type=jnp.float32),
                w, preferred_element_type=jnp.float32) + b
        else:
            # Â @ (H @ W) : N² term uses the smaller C_out
            pre = jnp.dot(
                adj, jnp.dot(h, w, preferred_element_type=jnp.float32),
                preferred_element_type=jnp.float32) + b
        if i == n_convs - 1:
            # Only the last layer's pre-activation is consumed downstream.
            emb_ref[...] = pre.astype(emb_ref.dtype)
        h = jnp.tanh(pre)
        # F.dropout(p=0.4, training=False) == identity (inference semantics)

    # post_mp: Linear -> Dropout(eval: identity) -> Linear
    h1 = jnp.dot(h, lin1_w_ref[...], preferred_element_type=jnp.float32) + lin1_b_ref[...]
    logits = jnp.dot(h1, lin2_w_ref[...], preferred_element_type=jnp.float32) + lin2_b_ref[...]

    # Row-wise log_softmax over the first `out_dim` (real) class lanes; the
    # remaining lanes are layout padding and are written out as zeros.
    n, out_pad = logits.shape
    lane = jax.lax.broadcasted_iota(jnp.int32, (n, out_pad), 1)
    valid = lane < out_dim
    masked = jnp.where(valid, logits, jnp.float32(-1e30))
    m = jnp.max(masked, axis=-1, keepdims=True)
    s = masked - m
    e = jnp.where(valid, jnp.exp(s), 0.0)
    lse = jnp.log(jnp.sum(e, axis=-1, keepdims=True))
    logp = s - lse
    out_ref[...] = jnp.where(valid, logp, 0.0).astype(out_ref.dtype)


def gcn_forward_fused(packed, x, adj, *, hidden_dim, out_dim):
    """Single pallas_call for the whole forward pass (eval mode)."""
    n = x.shape[0]
    n_convs = len(packed["convs"])
    hp = packed["convs"][-1][0].shape[1]   # padded hidden width (multiple of 128)
    op = packed["lin2_w_t"].shape[1]       # padded class width  (multiple of 128)

    flat_inputs = [adj, x]
    for (w, b) in packed["convs"]:
        flat_inputs += [w, b]
    flat_inputs += [packed["lin1_w_t"], packed["lin1_b"],
                    packed["lin2_w_t"], packed["lin2_b"]]

    kernel = functools.partial(_fused_gcn_kernel, n_convs=n_convs, out_dim=out_dim)
    emb_pad, logp_pad = pl.pallas_call(
        kernel,
        out_shape=(
            jax.ShapeDtypeStruct((n, hp), jnp.float32),   # last-conv pre-tanh
            jax.ShapeDtypeStruct((n, op), jnp.float32),   # log_softmax(logits)
        ),
        in_specs=[_full_spec(a.shape) for a in flat_inputs],
        out_specs=(_full_spec((n, hp)), _full_spec((n, op))),
    )(*flat_inputs)

    # Strip layout padding outside the kernel (stores inside stay lane-dense).
    return emb_pad[:, :hidden_dim], logp_pad[:, :out_dim]


# ----------------------------------------------------------------------------
# Plain-JAX glue: graph normalization, parameter init (padded + pre-transposed)
# ----------------------------------------------------------------------------
def gcn_norm_dense(edge_index, num_nodes):
    """Dense  Â = D^-1/2 (A + I) D^-1/2  matching pyg GCNConv's gcn_norm."""
    src = edge_index[0]
    dst = edge_index[1]
    a = jnp.zeros((num_nodes, num_nodes), jnp.float32)
    a = a.at[dst, src].add(1.0)                    # messages aggregated at dst
    a = a + jnp.eye(num_nodes, dtype=jnp.float32)  # add self loops
    deg = jnp.sum(a, axis=1)
    d_inv_sqrt = jnp.where(deg > 0.0, 1.0 / jnp.sqrt(deg), 0.0)
    return d_inv_sqrt[:, None] * a * d_inv_sqrt[None, :]


def glorot(key, shape):
    fan_in, fan_out = shape
    limit = jnp.sqrt(6.0 / (fan_in + fan_out))
    return jax.random.uniform(key, shape, jnp.float32, -limit, limit)


def _pad2d(a, rows, cols):
    out = jnp.zeros((rows, cols), a.dtype)
    return out.at[: a.shape[0], : a.shape[1]].set(a)


def init_params(key, input_dim, hidden_dim, out_dim, conv_layers):
    """Parameters padded to 128-lane widths and Linear weights pre-transposed
    to [in, out] — both done once at init, off the per-forward hot path."""
    hp = _round_up(hidden_dim, LANE)
    op = _round_up(out_dim, LANE)
    n_convs = conv_layers + 1
    keys = jax.random.split(key, n_convs + 4)

    convs = []
    dims = [(input_dim, hidden_dim)] + [(hidden_dim, hidden_dim)] * conv_layers
    for i, (cin, cout) in enumerate(dims):
        w = glorot(keys[i], (cin, cout))
        b = jnp.zeros((cout,), jnp.float32)
        in_rows = cin if i == 0 else hp  # layer>0 consumes padded hidden input
        convs.append((_pad2d(w, in_rows, hp), _pad2d(b.reshape(1, -1), 1, hp)))

    k = n_convs
    lin1_w = glorot(keys[k + 0], (hidden_dim, hidden_dim))  # torch (out, in)
    lin1_b = jax.random.uniform(keys[k + 1], (hidden_dim,), jnp.float32, -0.1, 0.1)
    lin2_w = glorot(keys[k + 2], (out_dim, hidden_dim))
    lin2_b = jax.random.uniform(keys[k + 3], (out_dim,), jnp.float32, -0.1, 0.1)

    return {
        "convs": convs,
        "lin1_w_t": _pad2d(lin1_w.T, hp, hp),
        "lin1_b": _pad2d(lin1_b.reshape(1, -1), 1, hp),
        "lin2_w_t": _pad2d(lin2_w.T, hp, op),
        "lin2_b": _pad2d(lin2_b.reshape(1, -1), 1, op),
    }


def gcn_forward_reference(packed, x, adj, *, hidden_dim, out_dim):
    """Pure-JAX reference (padding is mathematically inert)."""
    hi = jax.lax.Precision.HIGHEST
    h = x
    emb = None
    for (w, b) in packed["convs"]:
        pre = jnp.dot(jnp.dot(adj, h, precision=hi), w, precision=hi) + b
        emb = pre
        h = jnp.tanh(pre)
    h1 = jnp.dot(h, packed["lin1_w_t"], precision=hi) + packed["lin1_b"]
    logits = jnp.dot(h1, packed["lin2_w_t"], precision=hi) + packed["lin2_b"]
    logits = logits[:, :out_dim]
    return emb[:, :hidden_dim], jax.nn.log_softmax(logits, axis=-1)


# ----------------------------------------------------------------------------
if __name__ == "__main__":
    INPUT_DIM, HIDDEN_DIM, OUT_DIM = 8, 32, 4
    CONV_LAYERS = 2
    NUM_NODES = 16

    key = jax.random.PRNGKey(0)
    k_x, k_p = jax.random.split(key)

    # Node features [N, input_dim]
    x = jax.random.normal(k_x, (NUM_NODES, INPUT_DIM), jnp.float32)

    # Deterministic bidirectional ring graph: edge_index [2, 2N]
    idx = jnp.arange(NUM_NODES)
    nxt = (idx + 1) % NUM_NODES
    edge_index = jnp.stack(
        [jnp.concatenate([idx, nxt]), jnp.concatenate([nxt, idx])], axis=0
    ).astype(jnp.int32)

    adj = gcn_norm_dense(edge_index, NUM_NODES)
    params = init_params(k_p, INPUT_DIM, HIDDEN_DIM, OUT_DIM, CONV_LAYERS)

    fwd = jax.jit(functools.partial(
        gcn_forward_fused, hidden_dim=HIDDEN_DIM, out_dim=OUT_DIM))
    emb, log_probs = fwd(params, x, adj)
    jax.block_until_ready(emb)
    jax.block_until_ready(log_probs)

    assert emb.shape == (NUM_NODES, HIDDEN_DIM)
    assert log_probs.shape == (NUM_NODES, OUT_DIM)

    # Numerical sanity-check against a pure-JAX reference.
    emb_ref, logp_ref = gcn_forward_reference(
        params, x, adj, hidden_dim=HIDDEN_DIM, out_dim=OUT_DIM)
    assert jnp.allclose(emb, emb_ref, atol=1e-2, rtol=1e-2)
    assert jnp.allclose(log_probs, logp_ref, atol=1e-2, rtol=1e-2)

    print("KERNEL_OK")
</pallas_src>

<mosaic_0001>
module attributes {stable_mosaic.version = 11 : i64} {
  func.func @_fused_gcn_kernel(%arg0: memref<16x16xf32, #tpu.memory_space<vmem>>, %arg1: memref<16x8xf32, #tpu.memory_space<vmem>>, %arg2: memref<8x128xf32, #tpu.memory_space<vmem>>, %arg3: memref<1x128xf32, #tpu.memory_space<vmem>>, %arg4: memref<128x128xf32, #tpu.memory_space<vmem>>, %arg5: memref<1x128xf32, #tpu.memory_space<vmem>>, %arg6: memref<128x128xf32, #tpu.memory_space<vmem>>, %arg7: memref<1x128xf32, #tpu.memory_space<vmem>>, %arg8: memref<128x128xf32, #tpu.memory_space<vmem>>, %arg9: memref<1x128xf32, #tpu.memory_space<vmem>>, %arg10: memref<128x128xf32, #tpu.memory_space<vmem>>, %arg11: memref<1x128xf32, #tpu.memory_space<vmem>>, %arg12: memref<16x128xf32, #tpu.memory_space<vmem>>, %arg13: memref<16x128xf32, #tpu.memory_space<vmem>>) attributes {dimension_semantics = [], scalar_prefetch = 0 : i64, scratch_operands = 0 : i64, tpu.core_type = #tpu.core_type<tc>} {
    %c0 = arith.constant 0 : index
    %c0_0 = arith.constant 0 : index
    %0 = vector.load %arg0[%c0, %c0_0] : memref<16x16xf32, #tpu.memory_space<vmem>>, vector<16x16xf32>
    %c0_1 = arith.constant 0 : index
    %c0_2 = arith.constant 0 : index
    %1 = vector.load %arg1[%c0_1, %c0_2] : memref<16x8xf32, #tpu.memory_space<vmem>>, vector<16x8xf32>
    %c0_3 = arith.constant 0 : index
    %c0_4 = arith.constant 0 : index
    %2 = vector.load %arg2[%c0_3, %c0_4] : memref<8x128xf32, #tpu.memory_space<vmem>>, vector<8x128xf32>
    %c0_5 = arith.constant 0 : index
    %c0_6 = arith.constant 0 : index
    %3 = vector.load %arg3[%c0_5, %c0_6] : memref<1x128xf32, #tpu.memory_space<vmem>>, vector<1x128xf32>
    %cst = arith.constant dense<0.000000e+00> : vector<16x8xf32>
    %4 = tpu.matmul %0, %1, %cst {dimension_numbers = #tpu.dot_dimension_numbers<[1], [0], [0], [1], [0, 0, 1, 1], [], []>} : vector<16x16xf32>, vector<16x8xf32>, vector<16x8xf32> -> vector<16x8xf32>
    %cst_7 = arith.constant dense<0.000000e+00> : vector<16x128xf32>
    %5 = tpu.matmul %4, %2, %cst_7 {dimension_numbers = #tpu.dot_dimension_numbers<[1], [0], [0], [1], [0, 0, 1, 1], [], []>} : vector<16x8xf32>, vector<8x128xf32>, vector<16x128xf32> -> vector<16x128xf32>
    %6 = vector.broadcast %3 : vector<1x128xf32> to vector<16x128xf32>
    %7 = arith.addf %5, %6 : vector<16x128xf32>
    %8 = math.tanh %7 : vector<16x128xf32>
    %c0_8 = arith.constant 0 : index
    %c0_9 = arith.constant 0 : index
    %9 = vector.load %arg4[%c0_8, %c0_9] : memref<128x128xf32, #tpu.memory_space<vmem>>, vector<128x128xf32>
    %c0_10 = arith.constant 0 : index
    %c0_11 = arith.constant 0 : index
    %10 = vector.load %arg5[%c0_10, %c0_11] : memref<1x128xf32, #tpu.memory_space<vmem>>, vector<1x128xf32>
    %cst_12 = arith.constant dense<0.000000e+00> : vector<16x128xf32>
    %11 = tpu.matmul %0, %8, %cst_12 {dimension_numbers = #tpu.dot_dimension_numbers<[1], [0], [0], [1], [0, 0, 1, 1], [], []>} : vector<16x16xf32>, vector<16x128xf32>, vector<16x128xf32> -> vector<16x128xf32>
    %cst_13 = arith.constant dense<0.000000e+00> : vector<16x128xf32>
    %12 = tpu.matmul %11, %9, %cst_13 {dimension_numbers = #tpu.dot_dimension_numbers<[1], [0], [0], [1], [0, 0, 1, 1], [], []>} : vector<16x128xf32>, vector<128x128xf32>, vector<16x128xf32> -> vector<16x128xf32>
    %13 = vector.broadcast %10 : vector<1x128xf32> to vector<16x128xf32>
    %14 = arith.addf %12, %13 : vector<16x128xf32>
    %15 = math.tanh %14 : vector<16x128xf32>
    %c0_14 = arith.constant 0 : index
    %c0_15 = arith.constant 0 : index
    %16 = vector.load %arg6[%c0_14, %c0_15] : memref<128x128xf32, #tpu.memory_space<vmem>>, vector<128x128xf32>
    %c0_16 = arith.constant 0 : index
    %c0_17 = arith.constant 0 : index
    %17 = vector.load %arg7[%c0_16, %c0_17] : memref<1x128xf32, #tpu.memory_space<vmem>>, vector<1x128xf32>
    %cst_18 = arith.constant dense<0.000000e+00> : vector<16x128xf32>
    %18 = tpu.matmul %0, %15, %cst_18 {dimension_numbers = #tpu.dot_dimension_numbers<[1], [0], [0], [1], [0, 0, 1, 1], [], []>} : vector<16x16xf32>, vector<16x128xf32>, vector<16x128xf32> -> vector<16x128xf32>
    %cst_19 = arith.constant dense<0.000000e+00> : vector<16x128xf32>
    %19 = tpu.matmul %18, %16, %cst_19 {dimension_numbers = #tpu.dot_dimension_numbers<[1], [0], [0], [1], [0, 0, 1, 1], [], []>} : vector<16x128xf32>, vector<128x128xf32>, vector<16x128xf32> -> vector<16x128xf32>
    %20 = vector.broadcast %17 : vector<1x128xf32> to vector<16x128xf32>
    %21 = arith.addf %19, %20 : vector<16x128xf32>
    %c0_20 = arith.constant 0 : index
    %c0_21 = arith.constant 0 : index
    %22 = vector.load %arg12[%c0_20, %c0_21] : memref<16x128xf32, #tpu.memory_space<vmem>>, vector<16x128xf32>
    tpu.vector_store %arg12[%c0_20, %c0_21], %21 {strides = array<i32>} : memref<16x128xf32, #tpu.memory_space<vmem>>, vector<16x128xf32>,
    %23 = math.tanh %21 : vector<16x128xf32>
    %c0_22 = arith.constant 0 : index
    %c0_23 = arith.constant 0 : index
    %24 = vector.load %arg8[%c0_22, %c0_23] : memref<128x128xf32, #tpu.memory_space<vmem>>, vector<128x128xf32>
    %cst_24 = arith.constant dense<0.000000e+00> : vector<16x128xf32>
    %25 = tpu.matmul %23, %24, %cst_24 {dimension_numbers = #tpu.dot_dimension_numbers<[1], [0], [0], [1], [0, 0, 1, 1], [], []>} : vector<16x128xf32>, vector<128x128xf32>, vector<16x128xf32> -> vector<16x128xf32>
    %c0_25 = arith.constant 0 : index
    %c0_26 = arith.constant 0 : index
    %26 = vector.load %arg9[%c0_25, %c0_26] : memref<1x128xf32, #tpu.memory_space<vmem>>, vector<1x128xf32>
    %27 = vector.broadcast %26 : vector<1x128xf32> to vector<16x128xf32>
    %28 = arith.addf %25, %27 : vector<16x128xf32>
    %c0_27 = arith.constant 0 : index
    %c0_28 = arith.constant 0 : index
    %29 = vector.load %arg10[%c0_27, %c0_28] : memref<128x128xf32, #tpu.memory_space<vmem>>, vector<128x128xf32>
    %cst_29 = arith.constant dense<0.000000e+00> : vector<16x128xf32>
    %30 = tpu.matmul %28, %29, %cst_29 {dimension_numbers = #tpu.dot_dimension_numbers<[1], [0], [0], [1], [0, 0, 1, 1], [], []>} : vector<16x128xf32>, vector<128x128xf32>, vector<16x128xf32> -> vector<16x128xf32>
    %c0_30 = arith.constant 0 : index
    %c0_31 = arith.constant 0 : index
    %31 = vector.load %arg11[%c0_30, %c0_31] : memref<1x128xf32, #tpu.memory_space<vmem>>, vector<1x128xf32>
    %32 = vector.broadcast %31 : vector<1x128xf32> to vector<16x128xf32>
    %33 = arith.addf %30, %32 : vector<16x128xf32>
    %34 = tpu.iota {dimensions = array<i32: 1>} : vector<16x128xi32>
    %c4_i32 = arith.constant 4 : i32
    %35 = vector.broadcast %c4_i32 : i32 to vector<16x128xi32>
    %36 = arith.cmpi slt, %34, %35 : vector<16x128xi32>
    %cst_32 = arith.constant -1.000000e+30 : f32
    %37 = vector.broadcast %cst_32 : f32 to vector<16x128xf32>
    %38 = arith.select %36, %33, %37 : vector<16x128xi1>, vector<16x128xf32>
    %cst_33 = arith.constant dense<0xFF800000> : vector<16xf32>
    %39 = vector.multi_reduction <maximumf>, %38, %cst_33 [1] : vector<16x128xf32> to vector<16xf32>
    %40 = vector.shape_cast %39 : vector<16xf32> to vector<16x1xf32>
    %41 = vector.broadcast %40 : vector<16x1xf32> to vector<16x128xf32>
    %42 = arith.subf %38, %41 : vector<16x128xf32>
    %43 = math.exp %42 : vector<16x128xf32>
    %cst_34 = arith.constant 0.000000e+00 : f32
    %44 = vector.broadcast %cst_34 : f32 to vector<16x128xf32>
    %45 = arith.select %36, %43, %44 : vector<16x128xi1>, vector<16x128xf32>
    %cst_35 = arith.constant dense<0.000000e+00> : vector<16xf32>
    %46 = vector.multi_reduction <add>, %45, %cst_35 [1] : vector<16x128xf32> to vector<16xf32>
    %47 = vector.shape_cast %46 : vector<16xf32> to vector<16x1xf32>
    %48 = math.log %47 : vector<16x1xf32>
    %49 = vector.broadcast %48 : vector<16x1xf32> to vector<16x128xf32>
    %50 = arith.subf %42, %49 : vector<16x128xf32>
    %cst_36 = arith.constant 0.000000e+00 : f32
    %51 = vector.broadcast %cst_36 : f32 to vector<16x128xf32>
    %52 = arith.select %36, %50, %51 : vector<16x128xi1>, vector<16x128xf32>
    %c0_37 = arith.constant 0 : index
    %c0_38 = arith.constant 0 : index
    %53 = vector.load %arg13[%c0_37, %c0_38] : memref<16x128xf32, #tpu.memory_space<vmem>>, vector<16x128xf32>
    tpu.vector_store %arg13[%c0_37, %c0_38], %52 {strides = array<i32>} : memref<16x128xf32, #tpu.memory_space<vmem>>, vector<16x128xf32>,
    return
  }
}

</mosaic_0001>

<bundles_post_ra>
// kernel: gcn_forward_fused.1
= control target key start
LH: loop header
LB: loop body
LE: loop exit
PB: predicated region body
PF: predicated region fallthrough
CT: control target
= control target key end

     0   :  { %19 = vsyncpa [#allocation3], 0  ;;  %s1445_s0 = inlined_call_operand.vmem [shape: f32[16,16], index: 0, kind: input, shape index: {}]   ;;  %s1446_s1 = inlined_call_operand.vmem [shape: f32[16,8], index: 1, kind: input, shape index: {}]   ;;  %s1447_s2 = inlined_call_operand.vmem [shape: f32[8,128], index: 2, kind: input, shape index: {}]   ;;  %s1448_s3 = inlined_call_operand.vmem [shape: f32[1,128], index: 3, kind: input, shape index: {}]   ;;  %s1449_s4 = inlined_call_operand.hbm [shape: f32[128,128], index: 4, kind: input, shape index: {}]   ;;  %s1450_s5 = inlined_call_operand.vmem [shape: f32[1,128], index: 5, kind: input, shape index: {}]   ;;  %s1451_s6 = inlined_call_operand.hbm [shape: f32[128,128], index: 6, kind: input, shape index: {}]   ;;  %s1452_s7 = inlined_call_operand.vmem [shape: f32[1,128], index: 7, kind: input, shape index: {}]   ;;  %s1453_s8 = inlined_call_operand.hbm [shape: f32[128,128], index: 8, kind: input, shape index: {}]   ;;  %s1454_s9 = inlined_call_operand.vmem [shape: f32[1,128], index: 9, kind: input, shape index: {}]   ;;  %s1455_s10 = inlined_call_operand.hbm [shape: f32[128,128], index: 10, kind: input, shape index: {}]   ;;  %s1456_s11 = inlined_call_operand.vmem [shape: f32[1,128], index: 11, kind: input, shape index: {}]   ;;  %s1457_s12 = inlined_call_operand.hbm [shape: f32[16,128], index: 12, kind: output, shape index: {0}]   ;;  %s1458_s13 = inlined_call_operand.vmem [shape: f32[16,128], index: 13, kind: output, shape index: {1}]  }
   0x1   :  { %20 = vsyncpa [#allocation6], 0 }
   0x2   :  { %21 = vsyncpa [#allocation9], 0 }
   0x3   :  { %22 = vsyncpa [#allocation4], 0  ;;  %s1280_s25 = smov [#allocation5]   ;;  %s1281_s27 = smov [#allocation2]  }
   0x4   :  { %s50_s26 = sshll.u32 %s1280_s25, 4  ;;  %s36_s28 = sshll.u32 %s1281_s27, 4  ;;  %s51_s26 = int_to_ptr.vmem [resolvable:$true] %s50_s26  ;;  %s37_s28 = int_to_ptr.vmem [resolvable:$true] %s36_s28 }
   0x5   :  { %s1180_s29 = scalar_lea.vmem %s51_s26, 2048  ;;  %p1185_p1 = scmp.lt.s32.totalorder %s51_s26, %s51_s26 }
   0x6   :  { %p1181_p0 = scmp.ne.s32.totalorder %s51_s26, %s1180_s29  ;;  %p1186_p2 = scmp.lt.s32.totalorder %s1180_s29, %s1180_s29 }
   0x8   :  { %p1187_p3 = por %p1186_p2, %p1185_p1 }
   0xa   :  { %p1188_p4 = pnand %p1187_p3, %p1181_p0 }
   0xc   :  { %1191 = shalt.err (!%p1188_p4)
}
   0xd   :  { %s1282_s30 = smov 128   ;;  %s1283_s14 = smov 8  }
   0xe   :  { %56 = dma.hbm_to_vmem [thread:$0]  %s1451_s6, 2048, %s51_s26, [#allocation6], %s1282_s30, %s1282_s30, %s1283_s14  }
   0xf   :  { %s1200_s17 = scalar_lea.vmem %s37_s28, 2048  ;;  %p1205_p6 = scmp.lt.s32.totalorder %s37_s28, %s37_s28 }
  0x10   :  { %p1201_p5 = scmp.ne.s32.totalorder %s37_s28, %s1200_s17  ;;  %p1206_p7 = scmp.lt.s32.totalorder %s1200_s17, %s1200_s17 }
  0x12   :  { %p1207_p8 = por %p1206_p7, %p1205_p6 }
  0x14   :  { %p1208_p9 = pnand %p1207_p8, %p1201_p5 }
  0x16   :  { %1211 = shalt.err (!%p1208_p9)
}
  0x17   :  { %42 = dma.hbm_to_vmem [thread:$0]  %s1449_s4, 2048, %s37_s28, [#allocation3], %s1282_s30, %s1282_s30, %s1283_s14  }
  0x18   :  { %s1284_s20 = smov [#allocation7]   ;;  %s1285_s22 = smov [#allocation8]  }
  0x19   :  { %s64_s21 = sshll.u32 %s1284_s20, 4  ;;  %s78_s23 = sshll.u32 %s1285_s22, 4  ;;  %s65_s21 = int_to_ptr.vmem [resolvable:$true] %s64_s21  ;;  %s79_s23 = int_to_ptr.vmem [resolvable:$true] %s78_s23 }
  0x1a   :  { %s1220_s6 = scalar_lea.vmem %s65_s21, 2048  ;;  %p1225_p11 = scmp.lt.s32.totalorder %s65_s21, %s65_s21 }
  0x1b   :  { %p1221_p10 = scmp.ne.s32.totalorder %s65_s21, %s1220_s6  ;;  %p1226_p12 = scmp.lt.s32.totalorder %s1220_s6, %s1220_s6 }
  0x1d   :  { %p1227_p13 = por %p1226_p12, %p1225_p11 }
  0x1f   :  { %p1228_p0 = pnand %p1227_p13, %p1221_p10 }
  0x21   :  { %1231 = shalt.err (!%p1228_p0)
}
  0x22   :  { %70 = dma.hbm_to_vmem [thread:$0]  %s1453_s8, 2048, %s65_s21, [#allocation6], %s1282_s30, %s1282_s30, %s1283_s14  }
  0x23   :  { %s1240_s4 = scalar_lea.vmem %s79_s23, 2048  ;;  %p1245_p2 = scmp.lt.s32.totalorder %s79_s23, %s79_s23 }
  0x24   :  { %p1241_p1 = scmp.ne.s32.totalorder %s79_s23, %s1240_s4  ;;  %p1246_p3 = scmp.lt.s32.totalorder %s1240_s4, %s1240_s4 }
  0x26   :  { %p1247_p4 = por %p1246_p3, %p1245_p2 }
  0x28   :  { %p1248_p5 = pnand %p1247_p4, %p1241_p1 }
  0x2a   :  { %1251 = shalt.err (!%p1248_p5)
}
  0x2b   :  { %84 = dma.hbm_to_vmem [thread:$0]  %s1455_s10, 2048, %s79_s23, [#allocation9], %s1282_s30, %s1282_s30, %s1283_s14  }
  0x2c   :  { %1272 = dma.done.wait [#allocation3], 2048  }
  0x2d   :  { %1273 = vsyncadd [#allocation3], 4294965248 }
  0x2e   :  { %1274 = dma.done.wait [#allocation6], 4096  }
  0x2f   :  { %1275 = vsyncadd [#allocation6], 4294963200 }
  0x30   :  { %1276 = dma.done.wait [#allocation9], 2048  }
  0x31   :  { %1277 = vsyncadd [#allocation9], 4294965248  ;;  %vm105_vm0 = vcmask 130048   ;;  %v102_v0 = vld [vmem:[%s1446_s1 + $0x8] sm:$0xff]  ;;  %v101_v1 = vld [vmem:[%s1446_s1] sm:$0xff]  ;;  %vm193_vm1 = vcmask 64512  }
  0x32   :  { %v1390_v2 = vld [vmem:[%s1445_s0] sm:$0xff]  ;;  %979 = vmatprep.subr.mxu0 %v102_v0  ;;  %v1397_v3 = vld [vmem:[%s1445_s0 + $0x8] sm:$0xff]  ;;  %v292_v7 = vld [vmem:[#allocation2 + $0x78] sm:$0xff] }
  0x33   :  { %983 = vmatprep.mubr.msk.f32.mxu0 %vm105_vm0, %v1390_v2  ;;  %980 = vmatpush3.msra.mxu0 %v102_v0  ;;  %v103_v4 = vld [vmem:[%s1447_s2] sm:$0xff]  ;;  %v291_v8 = vld [vmem:[#allocation2 + $0x70] sm:$0xff]  ;;  %v290_v9 = vld [vmem:[#allocation2 + $0x68] sm:$0xff] }
  0x34   :  { %995 = vmatprep.mubr.msk.f32.mxu1 %vm105_vm0, %v1390_v2  ;;  %981 = vmatprep.subr.mxu0 %v101_v1  ;;  %v289_v10 = vld [vmem:[#allocation2 + $0x60] sm:$0xff]  ;;  %v288_v11 = vld [vmem:[#allocation2 + $0x58] sm:$0xff]  ;;  %v287_v12 = vld [vmem:[#allocation2 + $0x50] sm:$0xff] }
  0x35   :  { %982 = vmatpush3.msra.mxu0 %v101_v1  ;;  %v286_v13 = vld [vmem:[#allocation2 + $0x48] sm:$0xff]  ;;  %v285_v14 = vld [vmem:[#allocation2 + $0x40] sm:$0xff]  ;;  %v284_v15 = vld [vmem:[#allocation2 + $0x38] sm:$0xff] }
  0x36   :  { %984 = vmatmul.mubr.msk.f32.vlgmr.msra.gmra.mxu0 %vm105_vm0, %v1397_v3  ;;  %986 = vmatprep.subr.mxu0 %v103_v4  ;;  %v283_v16 = vld [vmem:[#allocation2 + $0x30] sm:$0xff]  ;;  %v282_v17 = vld [vmem:[#allocation2 + $0x28] sm:$0xff]  ;;  %v281_v18 = vld [vmem:[#allocation2 + $0x20] sm:$0xff] }
  0x37   :  { %987 = vmatpush3.msra.mxu0 %v103_v4  ;;  %v280_v19 = vld [vmem:[#allocation2 + $0x18] sm:$0xff]  ;;  %v279_v20 = vld [vmem:[#allocation2 + $0x10] sm:$0xff]  ;;  %v881_v21 = vld [vmem:[%s1448_s3] ss:$0 sm:$0xff] }
  0x38   :  { %998 = vmatprep.subr.mxu0 %v292_v7  ;;  %v278_v28 = vld [vmem:[#allocation2 + $0x8] sm:$0xff]  ;;  %v277_v29 = vld [vmem:[#allocation2] sm:$0xff]  ;;  %v467_v39 = vld [vmem:[#allocation5 + $0x78] sm:$0xff] }
  0x39   :  { %v886_v32 = vld [vmem:[%s1450_s5] ss:$0 sm:$0xff]  ;;  %v466_v40 = vld [vmem:[#allocation5 + $0x70] sm:$0xff]  ;;  %v465_v41 = vld [vmem:[#allocation5 + $0x68] sm:$0xff] }
  0x3a   :  { %v464_v42 = vld [vmem:[#allocation5 + $0x60] sm:$0xff]  ;;  %v463_v43 = vld [vmem:[#allocation5 + $0x58] sm:$0xff]  ;;  %v462_v44 = vld [vmem:[#allocation5 + $0x50] sm:$0xff] }
  0x3b   :  { %v461_v45 = vld [vmem:[#allocation5 + $0x48] sm:$0xff]  ;;  %v460_v46 = vld [vmem:[#allocation5 + $0x40] sm:$0xff]  ;;  %v459_v47 = vld [vmem:[#allocation5 + $0x38] sm:$0xff] }
  0x3c   :  { %v458_v48 = vld [vmem:[#allocation5 + $0x30] sm:$0xff]  ;;  %v457_v49 = vld [vmem:[#allocation5 + $0x28] sm:$0xff]  ;;  %v456_v50 = vld [vmem:[#allocation5 + $0x20] sm:$0xff] }
  0x3d   :  { %v455_v51 = vld [vmem:[#allocation5 + $0x18] sm:$0xff]  ;;  %v454_v52 = vld [vmem:[#allocation5 + $0x10] sm:$0xff]  ;;  %v453_v53 = vld [vmem:[#allocation5 + $0x8] sm:$0xff] }
  0x3e   :  { %v452_v54 = vld [vmem:[#allocation5] sm:$0xff]  ;;  %v644_v55 = vld [vmem:[#allocation7 + $0x78] sm:$0xff]  ;;  %v643_v56 = vld [vmem:[#allocation7 + $0x70] sm:$0xff] }
  0x3f   :  { %v642_v57 = vld [vmem:[#allocation7 + $0x68] sm:$0xff]  ;;  %v641_v58 = vld [vmem:[#allocation7 + $0x60] sm:$0xff]  ;;  %v640_v59 = vld [vmem:[#allocation7 + $0x58] sm:$0xff] }
  0x40   :  { %v639_v60 = vld [vmem:[#allocation7 + $0x50] sm:$0xff]  ;;  %v638_v63 = vld [vmem:[#allocation7 + $0x48] sm:$0xff]  ;;  %v637_v0 = vld [vmem:[#allocation7 + $0x40] sm:$0xff] }
  0x41   :  { %v636_v1 = vld [vmem:[#allocation7 + $0x38] sm:$0xff]  ;;  %v633_v4 = vld [vmem:[#allocation7 + $0x20] sm:$0xff] }
  0xf6   :  { %v985_v5 = vpop.f32.mrf.mxu0 }
  0xf8   :  { %v178_v6 = vpop.f32.mrf.mxu0 }
  0xf9   :  { %988 = vmatprep.mubr.msk.f32.mxu0 %vm193_vm1, %v178_v6  ;;  %v631_v6 = vld [vmem:[#allocation7 + $0x10] sm:$0xff] }
  0xfa   :  { %989 = vmatmul.mubr.msk.f32.vlgmr.msra.gmra.mxu0 %vm193_vm1, %v985_v5  ;;  %v632_v5 = vld [vmem:[#allocation7 + $0x18] sm:$0xff] }
  0xfb   :  { %999 = vmatpush3.msra.mxu0 %v292_v7  ;;  %v630_v7 = vld [vmem:[#allocation7 + $0x8] sm:$0xff] }
  0xfc   :  { %1000 = vmatprep.subr.mxu0 %v291_v8 }
  0xfd   :  { %1001 = vmatpush3.msra.mxu0 %v291_v8  ;;  %v629_v8 = vld [vmem:[#allocation7] sm:$0xff] }
  0xfe   :  { %1002 = vmatprep.subr.mxu0 %v290_v9 }
  0xff   :  { %1003 = vmatpush3.msra.mxu0 %v290_v9  ;;  %v742_v9 = vld [vmem:[#allocation8 + $0x78] sm:$0xff] }
 0x100   :  { %1004 = vmatprep.subr.mxu0 %v289_v10 }
 0x101   :  { %1005 = vmatpush3.msra.mxu0 %v289_v10  ;;  %v741_v10 = vld [vmem:[#allocation8 + $0x70] sm:$0xff] }
 0x102   :  { %1006 = vmatprep.subr.mxu0 %v288_v11 }
 0x103   :  { %1007 = vmatpush3.msra.mxu0 %v288_v11  ;;  %v740_v11 = vld [vmem:[#allocation8 + $0x68] sm:$0xff] }
 0x104   :  { %1008 = vmatprep.subr.mxu0 %v287_v12 }
 0x105   :  { %1009 = vmatpush3.msra.mxu0 %v287_v12  ;;  %v739_v12 = vld [vmem:[#allocation8 + $0x60] sm:$0xff] }
 0x106   :  { %1010 = vmatprep.subr.mxu0 %v286_v13 }
 0x107   :  { %1011 = vmatpush3.msra.mxu0 %v286_v13  ;;  %v738_v13 = vld [vmem:[#allocation8 + $0x58] sm:$0xff] }
 0x108   :  { %1012 = vmatprep.subr.mxu0 %v285_v14 }
 0x109   :  { %1013 = vmatpush3.msra.mxu0 %v285_v14  ;;  %v737_v14 = vld [vmem:[#allocation8 + $0x50] sm:$0xff] }
 0x10a   :  { %1014 = vmatprep.subr.mxu0 %v284_v15 }
 0x10b   :  { %1015 = vmatpush3.msra.mxu0 %v284_v15  ;;  %v736_v15 = vld [vmem:[#allocation8 + $0x48] sm:$0xff] }
 0x10c   :  { %1016 = vmatprep.subr.mxu0 %v283_v16 }
 0x10d   :  { %1017 = vmatpush3.msra.mxu0 %v283_v16  ;;  %v735_v16 = vld [vmem:[#allocation8 + $0x40] sm:$0xff] }
 0x10e   :  { %1018 = vmatprep.subr.mxu0 %v282_v17 }
 0x10f   :  { %1019 = vmatpush3.msra.mxu0 %v282_v17  ;;  %v734_v17 = vld [vmem:[#allocation8 + $0x38] sm:$0xff] }
 0x110   :  { %1020 = vmatprep.subr.mxu0 %v281_v18 }
 0x111   :  { %1021 = vmatpush3.msra.mxu0 %v281_v18  ;;  %v733_v18 = vld [vmem:[#allocation8 + $0x30] sm:$0xff] }
 0x112   :  { %1022 = vmatprep.subr.mxu0 %v280_v19 }
 0x113   :  { %1023 = vmatpush3.msra.mxu0 %v280_v19  ;;  %v732_v19 = vld [vmem:[#allocation8 + $0x28] sm:$0xff] }
 0x114   :  { %1024 = vmatprep.subr.mxu0 %v279_v20 }
 0x115   :  { %1025 = vmatpush3.msra.mxu0 %v279_v20  ;;  %v731_v20 = vld [vmem:[#allocation8 + $0x20] sm:$0xff] }
 0x116   :  { %1026 = vmatprep.subr.mxu0 %v278_v28 }
 0x117   :  { %1027 = vmatpush3.msra.mxu0 %v278_v28 }
 0x118   :  { %1028 = vmatprep.subr.mxu0 %v277_v29 }
 0x119   :  { %1029 = vmatpush3.msra.mxu0 %v277_v29  ;;  %v729_v29 = vld [vmem:[#allocation8 + $0x10] sm:$0xff] }
 0x11a   :  { %1075 = vmatprep.subr.mxu0 %v644_v55 }
 0x1ba   :  { %v990_v22 = vpop.f32.mrf.mxu0 }
 0x1bb   :  { %v272_v23 = vadd.f32 %v990_v22, %v881_v21  ;;  %v889_v22 = vld [vmem:[%s1452_s7] ss:$0 sm:$0xff] }
 0x1bc   :  { %v266_v24 = vpop.f32.mrf.mxu0 }
 0x1bd   :  { %1152 = vtanh.f32 %v272_v23  ;;  %v267_v25 = vadd.f32 %v881_v21, %v266_v24  ;;  %v730_v21 = vld [vmem:[#allocation8 + $0x18] sm:$0xff] }
 0x1bf   :  { %1154 = vtanh.f32 %v267_v25 }
 0x1ca   :  { %v1153_v26 = vpop.eup %1152 }
 0x1cb   :  { %991 = vmatprep.subr.mxu1 %v1153_v26 }
 0x1cc   :  { %v1155_v27 = vpop.eup %1154  ;;  %992 = vmatpush3.msra.mxu1 %v1153_v26 }
 0x1cd   :  { %993 = vmatprep.subr.mxu1 %v1155_v27 }
 0x1ce   :  { %994 = vmatpush3.msra.mxu1 %v1155_v27 }
 0x1cf   :  { %996 = vmatmul.mubr.msk.f32.vlgmr.msra.gmra.mxu1 %vm105_vm0, %v1397_v3 }
 0x1d0   :  { %1037 = vmatprep.mubr.msk.f32.mxu1 %vm105_vm0, %v1390_v2  ;;  %v635_v2 = vld [vmem:[#allocation7 + $0x30] sm:$0xff] }
 0x28f   :  { %v997_v30 = vpop.f32.mrf.mxu1 }
 0x291   :  { %v360_v31 = vpop.f32.mrf.mxu1 }
 0x292   :  { %1030 = vmatprep.mubr.f32.mxu0 %v360_v31  ;;  %v727_v31 = vld [vmem:[#allocation8] sm:$0xff] }
 0x293   :  { %1031 = vmatmul.mubr.f32.vlgmr.msra.gmra.mxu0 %v997_v30  ;;  %v728_v30 = vld [vmem:[#allocation8 + $0x8] sm:$0xff] }
 0x294   :  { %1076 = vmatpush3.msra.mxu0 %v644_v55 }
 0x295   :  { %1077 = vmatprep.subr.mxu0 %v643_v56 }
 0x296   :  { %1078 = vmatpush3.msra.mxu0 %v643_v56 }
 0x297   :  { %1079 = vmatprep.subr.mxu0 %v642_v57 }
 0x298   :  { %1080 = vmatpush3.msra.mxu0 %v642_v57 }
 0x299   :  { %1081 = vmatprep.subr.mxu0 %v641_v58 }
 0x29a   :  { %1082 = vmatpush3.msra.mxu0 %v641_v58 }
 0x29b   :  { %1083 = vmatprep.subr.mxu0 %v640_v59 }
 0x29c   :  { %1084 = vmatpush3.msra.mxu0 %v640_v59 }
 0x29d   :  { %1085 = vmatprep.subr.mxu0 %v639_v60 }
 0x29e   :  { %1086 = vmatpush3.msra.mxu0 %v639_v60 }
 0x29f   :  { %1087 = vmatprep.subr.mxu0 %v638_v63 }
 0x2a0   :  { %1088 = vmatpush3.msra.mxu0 %v638_v63 }
 0x2a1   :  { %1089 = vmatprep.subr.mxu0 %v637_v0 }
 0x2a2   :  { %1090 = vmatpush3.msra.mxu0 %v637_v0 }
 0x2a3   :  { %1091 = vmatprep.subr.mxu0 %v636_v1 }
 0x2a4   :  { %1092 = vmatpush3.msra.mxu0 %v636_v1 }
 0x2a5   :  { %1093 = vmatprep.subr.mxu0 %v635_v2 }
 0x2a6   :  { %1094 = vmatpush3.msra.mxu0 %v635_v2 }
 0x353   :  { %v1032_v33 = vpop.f32.mrf.mxu0 }
 0x354   :  { %v447_v34 = vadd.f32 %v1032_v33, %v886_v32  ;;  %v890_v33 = vld [vmem:[%s1454_s9] ss:$0 sm:$0xff]  ;;  %s1286_s9 = smov [#allocation10]  }
 0x355   :  { %v441_v35 = vpop.f32.mrf.mxu0 }
 0x356   :  { %1156 = vtanh.f32 %v447_v34  ;;  %v442_v36 = vadd.f32 %v886_v32, %v441_v35 }
 0x358   :  { %1158 = vtanh.f32 %v442_v36 }
 0x363   :  { %v1157_v37 = vpop.eup %1156 }
 0x364   :  { %1033 = vmatprep.subr.mxu1 %v1157_v37 }
 0x365   :  { %v1159_v38 = vpop.eup %1158  ;;  %1034 = vmatpush3.msra.mxu1 %v1157_v37  ;;  %v825_v37 = vlaneseq }
 0x366   :  { %1035 = vmatprep.subr.mxu1 %v1159_v38 }
 0x367   :  { %1036 = vmatpush3.msra.mxu1 %v1159_v38 }
 0x368   :  { %1038 = vmatmul.mubr.msk.f32.vlgmr.msra.gmra.mxu1 %vm105_vm0, %v1397_v3  ;;  %1040 = vmatprep.subr.mxu1 %v467_v39  ;;  %v634_v3 = vld [vmem:[#allocation7 + $0x28] sm:$0xff] }
 0x369   :  { %1041 = vmatpush3.msra.mxu1 %v467_v39  ;;  %1095 = vmatprep.subr.mxu0 %v634_v3  ;;  %v826_v39 = vand.u32 127, %v825_v37 }
 0x36a   :  { %1042 = vmatprep.subr.mxu1 %v466_v40  ;;  %1096 = vmatpush3.msra.mxu0 %v634_v3 }
 0x36b   :  { %1043 = vmatpush3.msra.mxu1 %v466_v40  ;;  %1097 = vmatprep.subr.mxu0 %v633_v4  ;;  %v891_v40 = vld [vmem:[%s1456_s11] ss:$0 sm:$0xff]  ;;  %vm827_vm2 = vcmp.lt.s32.totalorder %v826_v39, 4  ;;  %s861_s11 = sshll.u32 %s1286_s9, 4  ;;  %s862_s11 = int_to_ptr.vmem [resolvable:$true] %s861_s11 }
 0x36c   :  { %1044 = vmatprep.subr.mxu1 %v465_v41  ;;  %1098 = vmatpush3.msra.mxu0 %v633_v4  ;;  %s1252_s24 = scalar_lea.vmem %s862_s11, 256  ;;  %p1257_p7 = scmp.lt.s32.totalorder %s862_s11, %s862_s11 }
 0x36d   :  { %1045 = vmatpush3.msra.mxu1 %v465_v41  ;;  %1099 = vmatprep.subr.mxu0 %v632_v5  ;;  %p1253_p6 = scmp.ne.s32.totalorder %s862_s11, %s1252_s24  ;;  %p1258_p8 = scmp.lt.s32.totalorder %s1252_s24, %s1252_s24 }
 0x36e   :  { %1046 = vmatprep.subr.mxu1 %v464_v42  ;;  %1100 = vmatpush3.msra.mxu0 %v632_v5 }
 0x36f   :  { %1047 = vmatpush3.msra.mxu1 %v464_v42  ;;  %1101 = vmatprep.subr.mxu0 %v631_v6  ;;  %p1259_p9 = por %p1258_p8, %p1257_p7 }
 0x370   :  { %1048 = vmatprep.subr.mxu1 %v463_v43  ;;  %1102 = vmatpush3.msra.mxu0 %v631_v6 }
 0x371   :  { %1049 = vmatpush3.msra.mxu1 %v463_v43  ;;  %1103 = vmatprep.subr.mxu0 %v630_v7  ;;  %p1260_p10 = pnand %p1259_p9, %p1253_p6 }
 0x372   :  { %1050 = vmatprep.subr.mxu1 %v462_v44  ;;  %1104 = vmatpush3.msra.mxu0 %v630_v7 }
 0x373   :  { %1051 = vmatpush3.msra.mxu1 %v462_v44  ;;  %1105 = vmatprep.subr.mxu0 %v629_v8 }
 0x374   :  { %1052 = vmatprep.subr.mxu1 %v461_v45  ;;  %1106 = vmatpush3.msra.mxu0 %v629_v8 }
 0x375   :  { %1053 = vmatpush3.msra.mxu1 %v461_v45 }
 0x376   :  { %1054 = vmatprep.subr.mxu1 %v460_v46 }
 0x377   :  { %1055 = vmatpush3.msra.mxu1 %v460_v46 }
 0x378   :  { %1056 = vmatprep.subr.mxu1 %v459_v47 }
 0x379   :  { %1057 = vmatpush3.msra.mxu1 %v459_v47 }
 0x37a   :  { %1058 = vmatprep.subr.mxu1 %v458_v48 }
 0x37b   :  { %1059 = vmatpush3.msra.mxu1 %v458_v48 }
 0x37c   :  { %1060 = vmatprep.subr.mxu1 %v457_v49 }
 0x37d   :  { %1061 = vmatpush3.msra.mxu1 %v457_v49 }
 0x37e   :  { %1062 = vmatprep.subr.mxu1 %v456_v50 }
 0x37f   :  { %1063 = vmatpush3.msra.mxu1 %v456_v50 }
 0x380   :  { %1064 = vmatprep.subr.mxu1 %v455_v51 }
 0x381   :  { %1065 = vmatpush3.msra.mxu1 %v455_v51 }
 0x382   :  { %1066 = vmatprep.subr.mxu1 %v454_v52 }
 0x383   :  { %1067 = vmatpush3.msra.mxu1 %v454_v52 }
 0x384   :  { %1068 = vmatprep.subr.mxu1 %v453_v53 }
 0x385   :  { %1069 = vmatpush3.msra.mxu1 %v453_v53 }
 0x386   :  { %1070 = vmatprep.subr.mxu1 %v452_v54 }
 0x387   :  { %1071 = vmatpush3.msra.mxu1 %v452_v54 }
 0x388   :  { %1110 = vmatprep.subr.mxu1 %v742_v9 }
 0x428   :  { %v1039_v61 = vpop.f32.mrf.mxu1 }
 0x42a   :  { %v535_v62 = vpop.f32.mrf.mxu1 }
 0x42b   :  { %1072 = vmatprep.mubr.f32.mxu1 %v535_v62 }
 0x42c   :  { %1073 = vmatmul.mubr.f32.vlgmr.msra.gmra.mxu1 %v1039_v61 }
 0x42d   :  { %1111 = vmatpush3.msra.mxu1 %v742_v9 }
 0x42e   :  { %1112 = vmatprep.subr.mxu1 %v741_v10 }
 0x42f   :  { %1113 = vmatpush3.msra.mxu1 %v741_v10 }
 0x430   :  { %1114 = vmatprep.subr.mxu1 %v740_v11 }
 0x431   :  { %1115 = vmatpush3.msra.mxu1 %v740_v11 }
 0x432   :  { %1116 = vmatprep.subr.mxu1 %v739_v12 }
 0x433   :  { %1117 = vmatpush3.msra.mxu1 %v739_v12 }
 0x434   :  { %1118 = vmatprep.subr.mxu1 %v738_v13 }
 0x435   :  { %1119 = vmatpush3.msra.mxu1 %v738_v13 }
 0x436   :  { %1120 = vmatprep.subr.mxu1 %v737_v14 }
 0x437   :  { %1121 = vmatpush3.msra.mxu1 %v737_v14 }
 0x438   :  { %1122 = vmatprep.subr.mxu1 %v736_v15 }
 0x439   :  { %1123 = vmatpush3.msra.mxu1 %v736_v15 }
 0x43a   :  { %1124 = vmatprep.subr.mxu1 %v735_v16 }
 0x43b   :  { %1125 = vmatpush3.msra.mxu1 %v735_v16 }
 0x43c   :  { %1126 = vmatprep.subr.mxu1 %v734_v17 }
 0x43d   :  { %1127 = vmatpush3.msra.mxu1 %v734_v17 }
 0x43e   :  { %1128 = vmatprep.subr.mxu1 %v733_v18 }
 0x43f   :  { %1129 = vmatpush3.msra.mxu1 %v733_v18 }
 0x440   :  { %1130 = vmatprep.subr.mxu1 %v732_v19 }
 0x441   :  { %1131 = vmatpush3.msra.mxu1 %v732_v19 }
 0x442   :  { %1132 = vmatprep.subr.mxu1 %v731_v20 }
 0x443   :  { %1133 = vmatpush3.msra.mxu1 %v731_v20 }
 0x444   :  { %1134 = vmatprep.subr.mxu1 %v730_v21 }
 0x445   :  { %1135 = vmatpush3.msra.mxu1 %v730_v21 }
 0x446   :  { %1136 = vmatprep.subr.mxu1 %v729_v29 }
 0x447   :  { %1137 = vmatpush3.msra.mxu1 %v729_v29 }
 0x448   :  { %1138 = vmatprep.subr.mxu1 %v728_v30 }
 0x449   :  { %1139 = vmatpush3.msra.mxu1 %v728_v30 }
 0x44a   :  { %1140 = vmatprep.subr.mxu1 %v727_v31 }
 0x44b   :  { %1141 = vmatpush3.msra.mxu1 %v727_v31 }
 0x4ec   :  { %v1074_v23 = vpop.f32.mrf.mxu1 }
 0x4ed   :  { %v622_v24 = vadd.f32 %v1074_v23, %v889_v22 }
 0x4ee   :  { %v616_v25 = vpop.f32.mrf.mxu1 }
 0x4ef   :  { %626 = vst [vmem:[#allocation10 + $0x8] sm:$0xff] %v622_v24  ;;  %v617_v26 = vadd.f32 %v889_v22, %v616_v25 }
 0x4f1   :  { %625 = vst [vmem:[#allocation10] sm:$0xff] %v617_v26  ;;  %1160 = vtanh.f32 %v617_v26 }
 0x4f2   :  { %1162 = vtanh.f32 %v622_v24 }
 0x4fe   :  { %v1161_v27 = vpop.eup %1160 }
 0x4ff   :  { %v1163_v28 = vpop.eup %1162  ;;  %1107 = vmatprep.mubr.f32.mxu0 %v1161_v27 }
 0x500   :  { %1108 = vmatmul.mubr.f32.vlgmr.msra.gmra.mxu0 %v1163_v28 }
 0x5c0   :  { %v1109_v32 = vpop.f32.mrf.mxu0 }
 0x5c1   :  { %v724_v36 = vadd.f32 %v1109_v32, %v890_v33 }
 0x5c2   :  { %v718_v34 = vpop.f32.mrf.mxu0 }
 0x5c3   :  { %v719_v35 = vadd.f32 %v890_v33, %v718_v34 }
 0x5c5   :  { %1142 = vmatprep.mubr.f32.mxu1 %v719_v35 }
 0x5c6   :  { %1143 = vmatmul.mubr.f32.vlgmr.msra.gmra.mxu1 %v724_v36 }
 0x686   :  { %v1144_v38 = vpop.f32.mrf.mxu1 }
 0x687   :  { %v822_v43 = vadd.f32 %v1144_v38, %v891_v40 }
 0x688   :  { %v816_v41 = vpop.f32.mrf.mxu1 }
 0x689   :  { %v817_v42 = vadd.f32 %v891_v40, %v816_v41  ;;  %v829_v45 = vsel %vm827_vm2, %v822_v43, -1e+30 }
 0x68b   :  { %v828_v44 = vsel %vm827_vm2, %v817_v42, -1e+30 }
 0x68c   :  { %830 = vmax.xlane.f32.xlu0 %v828_v44 }
 0x690   :  { %832 = vmax.xlane.f32.xlu0 %v829_v45 }
 0x715   :  { %v831_v46 = vpop.xlane.xlu0 %830 }
 0x716   :  { %v834_v47 = vsub.f32 %v828_v44, %v831_v46 }
 0x718   :  { %v836_v48 = vmul.f32 1.442695, %v834_v47 }
 0x719   :  { %v833_v49 = vpop.xlane.xlu0 %832 }
 0x71a   :  { %1164 = vpow2.f32 %v836_v48  ;;  %v835_v50 = vsub.f32 %v829_v45, %v833_v49 }
 0x71c   :  { %v838_v51 = vmul.f32 1.442695, %v835_v50 }
 0x71e   :  { %1166 = vpow2.f32 %v838_v51 }
 0x727   :  { %v1165_v52 = vpop.eup %1164 }
 0x728   :  { %v840_v53 = vsel %vm827_vm2, %v1165_v52, 0.0 }
 0x729   :  { %842 = vadd.xlane.f32.xlu1 %v840_v53 }
 0x72b   :  { %v1167_v54 = vpop.eup %1166 }
 0x72c   :  { %v841_v55 = vsel %vm827_vm2, %v1167_v54, 0.0 }
 0x72d   :  { %844 = vadd.xlane.f32.xlu1 %v841_v55 }
 0x72e   :  { %1263 = shalt.err (!%p1260_p10)
}
 0x72f   :  { %867 = dma.vmem_to_hbm [thread:$0]  %s862_s11, 256, %s1457_s12, [#allocation4], %s1282_s30, %s1282_s30, %s1283_s14  }
 0x7b2   :  { %v843_v56 = vpop.xlane.xlu1 %842 }
 0x7b3   :  { %1168 = vlog2.f32 %v843_v56 }
 0x7b6   :  { %v845_v57 = vpop.xlane.xlu1 %844 }
 0x7b7   :  { %1170 = vlog2.f32 %v845_v57 }
 0x7c0   :  { %v1169_v58 = vpop.eup %1168 }
 0x7c1   :  { %v847_v59 = vmul.f32 0.6931472, %v1169_v58 }
 0x7c3   :  { %v850_v60 = vsub.f32 %v834_v47, %v847_v59 }
 0x7c4   :  { %v1171_v61 = vpop.eup %1170 }
 0x7c5   :  { %v852_v62 = vsel %vm827_vm2, %v850_v60, 0.0  ;;  %v849_v63 = vmul.f32 0.6931472, %v1171_v61 }
 0x7c6   :  { %854 = vst [vmem:[%s1458_s13] sm:$0xff] %v852_v62 }
 0x7c7   :  { %v851_v0 = vsub.f32 %v835_v50, %v849_v63 }
 0x7c9   :  { %v853_v1 = vsel %vm827_vm2, %v851_v0, 0.0 }
 0x7ca   :  { %855 = vst [vmem:[%s1458_s13 + $0x8] sm:$0xff] %v853_v1 }
 0x7cb   :  { %1278 = dma.done.wait [#allocation4], 256  }
 0x7cc   :  { %1279 = vsyncadd [#allocation4], 4294967040 }
 0x7cd   :  { %875 = vsyncpa [#allocation3], 1 }
 0x7ce   :  { %876 = vsyncpa [#allocation6], 1 }
 0x7cf   :  { %877 = vsyncpa [#allocation9], 1 }
 0x7d0   :  { %878 = vsyncpa [#allocation4], 1 }

</bundles_post_ra>
